<compile_context>
chip_gen: v6e
topology: v6e:2x2x1
jax: 0.10.0
libtpu: 0.0.40
codegen_flags: <defaults>
</compile_context>

<pallas_src>
import functools

import jax
import jax.numpy as jnp
from jax.experimental import pallas as pl
from jax.experimental.pallas import tpu as pltpu


# -----------------------------------------------------------------------------
# Kernel
# -----------------------------------------------------------------------------
def downsample_add_kernel(w_ref, shift_ref, feat_ref, x_ref, o_ref):
    """o[b] = x[b] + W_fused @ feat[b] + shift for each batch row of the block.

    Tail tiles may carry garbage in padded lanes / padded batch rows; every
    output element depends only on its own (batch, spatial) column and Pallas
    masks out-of-bounds stores, so the garbage never reaches HBM.
    """
    w = w_ref[...]                       # (Cout, Cin)  BN scale pre-folded, f32/bf16
    shift = shift_ref[...]               # (Cout, 1)    f32, lane-broadcast
    b_blk = feat_ref.shape[0]
    for b in range(b_blk):               # static & small (<= 8) -> unrolled
        conv = jnp.dot(w, feat_ref[b], preferred_element_type=jnp.float32)  # (Cout, TS)
        o_ref[b] = (x_ref[b].astype(jnp.float32) + conv + shift).astype(o_ref.dtype)


# -----------------------------------------------------------------------------
# Tiling heuristics (budgeted for the smallest-VMEM generation: v7x, 64 MiB)
# -----------------------------------------------------------------------------
def _choose_tiling(N, Cin, Cout, S, stream_bytes, xo_bytes):
    LANE = 128
    VMEM_BUDGET = 44 * 2**20                    # conservative vs v7x's 64 MiB physical
    # Resident weight + shift, budgeted as if double-buffered (fallback path).
    resident = 2 * (Cout * Cin * stream_bytes + Cout * 4)
    stream_budget = max(VMEM_BUDGET - resident, 8 * 2**20)

    if S >= LANE:
        b_blk = 1
        # Double-buffered feat-in + x-in + out bytes per spatial (lane) column.
        per_col = 2 * (Cin * stream_bytes + 2 * Cout * xo_bytes)
        ts = min(2048, max(LANE, (stream_budget // per_col) // LANE * LANE))
        if S <= ts:
            ts = S                              # full spatial extent (block == array dim)
        n_s = pl.cdiv(S, ts)
        # v7x has 2 TensorCores: keep >= 2 parallel grid steps when possible.
        if N * n_s < 2 and S >= 2 * LANE:
            ts = ((S + 1) // 2 + LANE - 1) // LANE * LANE
            n_s = pl.cdiv(S, ts)
    else:
        # Deep layers (7x7, ...): spatial extent narrower than one vreg row.
        # Amortize per-step overhead over several batch items, but keep >= 2
        # batch steps (when N >= 2) so both v7x TensorCores get work.
        ts = S
        n_s = 1
        b_blk = max(1, min(N, 512 // max(S, 1)))
        if N >= 2:
            b_blk = max(1, min(b_blk, N // 2))

    n_b = pl.cdiv(N, b_blk)
    needed = 2 * b_blk * ts * (Cin * stream_bytes + 2 * Cout * xo_bytes) + resident
    vmem_limit = int(min(60 * 2**20, max(32 * 2**20, needed + 8 * 2**20)))
    return b_blk, ts, n_b, n_s, vmem_limit


# -----------------------------------------------------------------------------
# Jitted implementation (jit so allow_input_fusion can fuse the strided slice)
# -----------------------------------------------------------------------------
@functools.partial(
    jax.jit,
    static_argnames=("stride", "eps", "stream_dtype", "single_buffer_resident"))
def _downsample_impl(x, feat, weight, gamma, beta, running_mean, running_var,
                     *, stride, eps, stream_dtype, single_buffer_resident):
    N, Cin, H, W = feat.shape
    _, Cout, Ho, Wo = x.shape
    # PyTorch Conv2d(k=1, stride, pad=0) output size == floor((H-1)/stride)+1,
    # which equals len(range(0, H, stride)); exact for odd H/W as well.
    assert Ho == (H - 1) // stride + 1 and Wo == (W - 1) // stride + 1
    S = Ho * Wo

    stream = stream_dtype if stream_dtype is not None else feat.dtype
    stream_bytes = jnp.dtype(stream).itemsize
    xo_bytes = jnp.dtype(x.dtype).itemsize

    # 1x1 strided conv == per-batch channel matmul over the subsampled positions.
    # NCHW order preserved: strided slice + free reshape, no transposes.  Under
    # jit, allow_input_fusion lets XLA fuse these producers into the kernel's
    # input DMA, so feat_s is never materialized as an extra HBM write+read.
    feat_s = feat[:, :, ::stride, ::stride].reshape(N, Cin, S).astype(stream)
    x_flat = x.reshape(N, Cout, S)

    # Fold eval-mode BatchNorm into the conv weight (scale) + per-channel shift.
    inv_std = jax.lax.rsqrt(running_var.astype(jnp.float32) + eps)
    scale = gamma.astype(jnp.float32) * inv_std                        # (Cout,)
    shift = (beta.astype(jnp.float32)
             - running_mean.astype(jnp.float32) * scale).reshape(Cout, 1)
    w_fused = (weight.astype(jnp.float32) * scale[:, None]).astype(stream)

    b_blk, TS, n_b, n_s, vmem_limit = _choose_tiling(
        N, Cin, Cout, S, stream_bytes, xo_bytes)

    cost = pl.CostEstimate(
        flops=2 * N * Cout * Cin * S + N * Cout * S,
        transcendentals=0,
        bytes_accessed=(N * Cin * S * stream_bytes          # feat (streamed)
                        + 2 * N * Cout * S * xo_bytes       # x in + out
                        + Cout * Cin * stream_bytes + Cout * 4),
    )

    # Resident operands: constant index_map -> single-buffer to free VMEM.
    resident_kwargs = (
        dict(pipeline_mode=pl.Buffered(1)) if single_buffer_resident else {})
    in_specs = [
        pl.BlockSpec((Cout, Cin), lambda nb, j: (0, 0), **resident_kwargs),
        pl.BlockSpec((Cout, 1), lambda nb, j: (0, 0), **resident_kwargs),
        pl.BlockSpec((b_blk, Cin, TS), lambda nb, j: (nb, 0, j)),    # feat tile
        pl.BlockSpec((b_blk, Cout, TS), lambda nb, j: (nb, 0, j)),   # residual x tile
    ]

    out_flat = pl.pallas_call(
        downsample_add_kernel,
        out_shape=jax.ShapeDtypeStruct((N, Cout, S), x.dtype),
        grid=(n_b, n_s),
        in_specs=in_specs,
        out_specs=pl.BlockSpec((b_blk, Cout, TS), lambda nb, j: (nb, 0, j)),
        compiler_params=pltpu.CompilerParams(
            dimension_semantics=("parallel", "parallel"),
            vmem_limit_bytes=vmem_limit,
            allow_input_fusion=[False, False, True, True],
        ),
        cost_estimate=cost,
    )(w_fused, shift, feat_s, x_flat)

    return out_flat.reshape(N, Cout, Ho, Wo)


def downsample_module(x, feat, weight, gamma, beta, running_mean, running_var,
                      *, stride=2, eps=1e-5, stream_dtype=None):
    """Equivalent of DownSample.forward(x) with
       downsample = Conv2d(Cin, Cout, 1, stride, bias=False) + BatchNorm2d(Cout) (eval).

    x:      (N, Cout, Ho, Wo)  NCHW
    feat:   (N, Cin,  H,  W)   NCHW
    weight: (Cout, Cin)        (1x1 conv kernel squeezed)
    stream_dtype: optionally stream feat + fused weight in a narrower dtype
    (e.g. jnp.bfloat16) to halve their HBM traffic; accumulation stays f32.
    """
    kwargs = dict(stride=stride, eps=eps, stream_dtype=stream_dtype)
    try:
        out = _downsample_impl(x, feat, weight, gamma, beta, running_mean,
                               running_var, single_buffer_resident=True, **kwargs)
        return jax.block_until_ready(out)
    except Exception:
        # pl.Buffered(1) not accepted by this jax version -> default buffering.
        out = _downsample_impl(x, feat, weight, gamma, beta, running_mean,
                               running_var, single_buffer_resident=False, **kwargs)
        return jax.block_until_ready(out)


def _reference(x, feat, weight, gamma, beta, running_mean, running_var,
               *, stride=2, eps=1e-5):
    feat_s = feat[:, :, ::stride, ::stride]
    conv = jnp.einsum('ncHW,oc->noHW', feat_s, weight)
    inv_std = 1.0 / jnp.sqrt(running_var + eps)
    bn = (conv - running_mean[None, :, None, None]) * inv_std[None, :, None, None]
    bn = bn * gamma[None, :, None, None] + beta[None, :, None, None]
    return x + bn


if __name__ == "__main__":
    key = jax.random.PRNGKey(0)
    k1, k2, k3, k4, k5, k6, k7 = jax.random.split(key, 7)

    # Small shapes consistent with a ResNet downsample branch:
    N, Cin, Cout, H, W, stride = 2, 4, 8, 16, 16, 2

    feat = jax.random.normal(k1, (N, Cin, H, W), jnp.float32)
    x = jax.random.normal(k2, (N, Cout, H // stride, W // stride), jnp.float32)

    # Deterministic synthetic parameters (1x1 conv weight squeezed + BN stats).
    weight = jax.random.normal(k3, (Cout, Cin), jnp.float32) * 0.1
    gamma = 1.0 + 0.1 * jax.random.normal(k4, (Cout,), jnp.float32)
    beta = 0.1 * jax.random.normal(k5, (Cout,), jnp.float32)
    running_mean = 0.1 * jax.random.normal(k6, (Cout,), jnp.float32)
    running_var = jnp.abs(1.0 + 0.1 * jax.random.normal(k7, (Cout,), jnp.float32))

    ref = _reference(x, feat, weight, gamma, beta, running_mean, running_var,
                     stride=stride)

    # f32 streaming: matches the PyTorch eval-mode module at tight tolerance.
    out = downsample_module(x, feat, weight, gamma, beta, running_mean,
                            running_var, stride=stride)
    out = jax.block_until_ready(out)
    assert out.shape == x.shape
    assert jnp.allclose(out, ref, atol=1e-5, rtol=1e-5)

    # Odd spatial extent (15 -> 8 with stride 2): exercises the ceil-size path.
    feat_o = jax.random.normal(k1, (1, Cin, 15, 15), jnp.float32)
    x_o = jax.random.normal(k2, (1, Cout, 8, 8), jnp.float32)
    out_o = downsample_module(x_o, feat_o, weight, gamma, beta, running_mean,
                              running_var, stride=stride)
    ref_o = _reference(x_o, feat_o, weight, gamma, beta, running_mean,
                       running_var, stride=stride)
    assert jnp.allclose(jax.block_until_ready(out_o), ref_o, atol=1e-5, rtol=1e-5)

    # bf16 streaming of feat + fused weight (halves their HBM traffic, f32 acc);
    # looser tolerance per bf16 rounding.
    out_bf16 = downsample_module(x, feat, weight, gamma, beta, running_mean,
                                 running_var, stride=stride,
                                 stream_dtype=jnp.bfloat16)
    out_bf16 = jax.block_until_ready(out_bf16)
    assert jnp.allclose(out_bf16, ref, atol=5e-2, rtol=5e-2)

    print("KERNEL_OK")
</pallas_src>

<mosaic_0001>
module attributes {stable_mosaic.version = 11 : i64} {
  func.func @downsample_add_kernel(%arg0: i32, %arg1: i32, %arg2: memref<8x4xf32, #tpu.memory_space<vmem>>, %arg3: memref<8x1xf32, #tpu.memory_space<vmem>>, %arg4: memref<1x4x64xf32, #tpu.memory_space<vmem>>, %arg5: memref<1x8x64xf32, #tpu.memory_space<vmem>>, %arg6: memref<1x8x64xf32, #tpu.memory_space<vmem>>) attributes {dimension_semantics = [#tpu.dimension_semantics<parallel>, #tpu.dimension_semantics<parallel>], iteration_bounds = array<i64: 2, 1>, scalar_prefetch = 0 : i64, scratch_operands = 0 : i64, tpu.core_type = #tpu.core_type<tc>, window_params = [{pipeline_mode = #tpu.pipeline_mode<synchronous>, transform_indices = @transform_0, window_bounds = array<i64: 8, 4>}, {pipeline_mode = #tpu.pipeline_mode<synchronous>, transform_indices = @transform_1, window_bounds = array<i64: 8, 1>}, {transform_indices = @transform_2, window_bounds = array<i64: 1, 4, 64>}, {transform_indices = @transform_3, window_bounds = array<i64: 1, 8, 64>}, {transform_indices = @transform_4, window_bounds = array<i64: 1, 8, 64>}]} {
    %c0 = arith.constant 0 : index
    %c0_0 = arith.constant 0 : index
    %0 = vector.load %arg2[%c0, %c0_0] : memref<8x4xf32, #tpu.memory_space<vmem>>, vector<8x4xf32>
    %c0_1 = arith.constant 0 : index
    %c0_2 = arith.constant 0 : index
    %1 = vector.load %arg3[%c0_1, %c0_2] : memref<8x1xf32, #tpu.memory_space<vmem>>, vector<8x1xf32>
    %c0_3 = arith.constant 0 : index
    %c0_4 = arith.constant 0 : index
    %c0_5 = arith.constant 0 : index
    %2 = vector.load %arg4[%c0_3, %c0_4, %c0_5] : memref<1x4x64xf32, #tpu.memory_space<vmem>>, vector<1x4x64xf32>
    %3 = vector.shape_cast %2 : vector<1x4x64xf32> to vector<4x64xf32>
    %cst = arith.constant dense<0.000000e+00> : vector<8x64xf32>
    %4 = tpu.matmul %0, %3, %cst {dimension_numbers = #tpu.dot_dimension_numbers<[1], [0], [0], [1], [0, 0, 1, 1], [], []>} : vector<8x4xf32>, vector<4x64xf32>, vector<8x64xf32> -> vector<8x64xf32>
    %c0_6 = arith.constant 0 : index
    %c0_7 = arith.constant 0 : index
    %c0_8 = arith.constant 0 : index
    %5 = vector.load %arg5[%c0_6, %c0_7, %c0_8] : memref<1x8x64xf32, #tpu.memory_space<vmem>>, vector<1x8x64xf32>
    %6 = vector.shape_cast %5 : vector<1x8x64xf32> to vector<8x64xf32>
    %7 = arith.addf %6, %4 : vector<8x64xf32>
    %8 = vector.broadcast %1 : vector<8x1xf32> to vector<8x64xf32>
    %9 = arith.addf %7, %8 : vector<8x64xf32>
    %c0_9 = arith.constant 0 : index
    %c0_10 = arith.constant 0 : index
    %c0_11 = arith.constant 0 : index
    %10 = vector.load %arg6[%c0_9, %c0_10, %c0_11] : memref<1x8x64xf32, #tpu.memory_space<vmem>>, vector<1x8x64xf32>
    %11 = vector.shape_cast %10 : vector<1x8x64xf32> to vector<8x64xf32>
    %12 = vector.shape_cast %9 : vector<8x64xf32> to vector<1x8x64xf32>
    tpu.vector_store %arg6[%c0_9, %c0_10, %c0_11], %12 {strides = array<i32>} : memref<1x8x64xf32, #tpu.memory_space<vmem>>, vector<1x8x64xf32>,
    return
  }
  func.func @transform_0(%arg0: i32, %arg1: i32) -> (i32, i32) {
    %c0_i32 = arith.constant 0 : i32
    %c0_i32_0 = arith.constant 0 : i32
    %c0_i32_1 = arith.constant 0 : i32
    return %c0_i32, %c0_i32_0 : i32, i32
  }
  func.func @transform_1(%arg0: i32, %arg1: i32) -> (i32, i32) {
    %c0_i32 = arith.constant 0 : i32
    %c0_i32_0 = arith.constant 0 : i32
    %c0_i32_1 = arith.constant 0 : i32
    return %c0_i32, %c0_i32_0 : i32, i32
  }
  func.func @transform_2(%arg0: i32, %arg1: i32) -> (i32, i32, i32) {
    %c0_i32 = arith.constant 0 : i32
    %c0_i32_0 = arith.constant 0 : i32
    return %arg0, %c0_i32, %arg1 : i32, i32, i32
  }
  func.func @transform_3(%arg0: i32, %arg1: i32) -> (i32, i32, i32) {
    %c0_i32 = arith.constant 0 : i32
    %c0_i32_0 = arith.constant 0 : i32
    return %arg0, %c0_i32, %arg1 : i32, i32, i32
  }
  func.func @transform_4(%arg0: i32, %arg1: i32) -> (i32, i32, i32) {
    %c0_i32 = arith.constant 0 : i32
    %c0_i32_0 = arith.constant 0 : i32
    return %arg0, %c0_i32, %arg1 : i32, i32, i32
  }
}

module attributes {stable_mosaic.version = 11 : i64} {
  func.func @downsample_add_kernel(%arg0: i32, %arg1: i32, %arg2: memref<8x4xf32, #tpu.memory_space<vmem>>, %arg3: memref<8x1xf32, #tpu.memory_space<vmem>>, %arg4: memref<1x4x64xf32, #tpu.memory_space<vmem>>, %arg5: memref<1x8x64xf32, #tpu.memory_space<vmem>>, %arg6: memref<1x8x64xf32, #tpu.memory_space<vmem>>) attributes {dimension_semantics = [#tpu.dimension_semantics<parallel>, #tpu.dimension_semantics<parallel>], iteration_bounds = array<i64: 2, 1>, scalar_prefetch = 0 : i64, scratch_operands = 0 : i64, tpu.core_type = #tpu.core_type<tc>, window_params = [{pipeline_mode = #tpu.pipeline_mode<synchronous>, transform_indices = @transform_0, window_bounds = array<i64: 8, 4>}, {pipeline_mode = #tpu.pipeline_mode<synchronous>, transform_indices = @transform_1, window_bounds = array<i64: 8, 1>}, {transform_indices = @transform_2, window_bounds = array<i64: 1, 4, 64>}, {transform_indices = @transform_3, window_bounds = array<i64: 1, 8, 64>}, {transform_indices = @transform_4, window_bounds = array<i64: 1, 8, 64>}]} {
    %c0 = arith.constant 0 : index
    %c0_0 = arith.constant 0 : index
    %0 = vector.load %arg2[%c0, %c0_0] : memref<8x4xf32, #tpu.memory_space<vmem>>, vector<8x4xf32>
    %c0_1 = arith.constant 0 : index
    %c0_2 = arith.constant 0 : index
    %1 = vector.load %arg3[%c0_1, %c0_2] : memref<8x1xf32, #tpu.memory_space<vmem>>, vector<8x1xf32>
    %c0_3 = arith.constant 0 : index
    %c0_4 = arith.constant 0 : index
    %c0_5 = arith.constant 0 : index
    %2 = vector.load %arg4[%c0_3, %c0_4, %c0_5] : memref<1x4x64xf32, #tpu.memory_space<vmem>>, vector<1x4x64xf32>
    %3 = vector.shape_cast %2 : vector<1x4x64xf32> to vector<4x64xf32>
    %cst = arith.constant dense<0.000000e+00> : vector<8x64xf32>
    %4 = tpu.matmul %0, %3, %cst {dimension_numbers = #tpu.dot_dimension_numbers<[1], [0], [0], [1], [0, 0, 1, 1], [], []>} : vector<8x4xf32>, vector<4x64xf32>, vector<8x64xf32> -> vector<8x64xf32>
    %c0_6 = arith.constant 0 : index
    %c0_7 = arith.constant 0 : index
    %c0_8 = arith.constant 0 : index
    %5 = vector.load %arg5[%c0_6, %c0_7, %c0_8] : memref<1x8x64xf32, #tpu.memory_space<vmem>>, vector<1x8x64xf32>
    %6 = vector.shape_cast %5 : vector<1x8x64xf32> to vector<8x64xf32>
    %7 = arith.addf %6, %4 : vector<8x64xf32>
    %8 = vector.broadcast %1 : vector<8x1xf32> to vector<8x64xf32>
    %9 = arith.addf %7, %8 : vector<8x64xf32>
    %c0_9 = arith.constant 0 : index
    %c0_10 = arith.constant 0 : index
    %c0_11 = arith.constant 0 : index
    %10 = vector.load %arg6[%c0_9, %c0_10, %c0_11] : memref<1x8x64xf32, #tpu.memory_space<vmem>>, vector<1x8x64xf32>
    %11 = vector.shape_cast %10 : vector<1x8x64xf32> to vector<8x64xf32>
    %12 = vector.shape_cast %9 : vector<8x64xf32> to vector<1x8x64xf32>
    tpu.vector_store %arg6[%c0_9, %c0_10, %c0_11], %12 {strides = array<i32>} : memref<1x8x64xf32, #tpu.memory_space<vmem>>, vector<1x8x64xf32>,
    return
  }
  func.func @transform_0(%arg0: i32, %arg1: i32) -> (i32, i32) {
    %c0_i32 = arith.constant 0 : i32
    %c0_i32_0 = arith.constant 0 : i32
    %c0_i32_1 = arith.constant 0 : i32
    return %c0_i32, %c0_i32_0 : i32, i32
  }
  func.func @transform_1(%arg0: i32, %arg1: i32) -> (i32, i32) {
    %c0_i32 = arith.constant 0 : i32
    %c0_i32_0 = arith.constant 0 : i32
    %c0_i32_1 = arith.constant 0 : i32
    return %c0_i32, %c0_i32_0 : i32, i32
  }
  func.func @transform_2(%arg0: i32, %arg1: i32) -> (i32, i32, i32) {
    %c0_i32 = arith.constant 0 : i32
    %c0_i32_0 = arith.constant 0 : i32
    return %arg0, %c0_i32, %arg1 : i32, i32, i32
  }
  func.func @transform_3(%arg0: i32, %arg1: i32) -> (i32, i32, i32) {
    %c0_i32 = arith.constant 0 : i32
    %c0_i32_0 = arith.constant 0 : i32
    return %arg0, %c0_i32, %arg1 : i32, i32, i32
  }
  func.func @transform_4(%arg0: i32, %arg1: i32) -> (i32, i32, i32) {
    %c0_i32 = arith.constant 0 : i32
    %c0_i32_0 = arith.constant 0 : i32
    return %arg0, %c0_i32, %arg1 : i32, i32, i32
  }
}

</mosaic_0001>

<bundles_post_ra>
// kernel: _downsample_impl.1
= control target key start
LH: loop header
LB: loop body
LE: loop exit
PB: predicated region body
PF: predicated region fallthrough
CT: control target
= control target key end

     0   :  { %s531_s15 = smov 0   ;;  %s533_s16 = smov 0   ;;  %s573_s0 = inlined_call_operand.vmem [shape: f32[8,4], index: 0, kind: input, shape index: {}]   ;;  %s574_s1 = inlined_call_operand.vmem [shape: f32[8,1], index: 1, kind: input, shape index: {}]   ;;  %s575_s2 = inlined_call_operand.vmem [shape: f32[2,4,64], index: 2, kind: input, shape index: {}]   ;;  %s576_s3 = inlined_call_operand.vmem [shape: f32[2,8,64], index: 3, kind: input, shape index: {}]   ;;  %s577_s4 = inlined_call_operand.vmem [shape: f32[2,8,64], index: 4, kind: output, shape index: {}]  }
   0x1   :  { %s535_s17 = smov 0  }
   0x2 LB: > { %s26_s18 = sadd.s32 1, %s497_s16  ;;  %p436_p0 = scmp.ge.s32.totalorder %s501_s17, 1  ;;  %s501_s17 = sphi %s535_s17, %s14_s17   ;;  %s497_s16 = sphi %s533_s16, %s579_s16   ;;  %s493_s15 = sphi %s531_s15, %s578_s15  }
   0x3   : > { %p28_p1 = scmp.ge.s32.totalorder %s26_s18, 2  ;;  %p194_p2 = scmp.lt.s32.totalorder %s501_s17, 3 }
   0x5   : > { %s581_s18 = smov (%p28_p1, %s26_s18), 0  ;;  %p195_p3 = pnand %p436_p0, %p194_p2 }
   0x6   : > { %p231_p4 = scmp.lt.s32.totalorder (!%p195_p3), %s493_s15, 1 }
   0x7   : > { %198 = sbr.rel (%p195_p3) target bundleno = 215 (0xd7), region = 36 }
   0xc   : > { %v503_v0 = vmov 0.0   ;;  %vm504_vm0 = vmmov 0   ;;  %v253_v1 = vld [vmem:[%s574_s1] sm:$0xff]  ;;  %s583_s15 = smov (!%p231_p4, %s493_s15), 1  ;;  %v505_v2 = vmov 0   ;;  %vm259_vm1 = vcmask 1043456  }
   0xd   : > { %446 = vmatprep.subr.mxu0 %v503_v0  ;;  %448 = vmatprep.mubr.msk.f32.mxu0 %vm504_vm0, %v503_v0  ;;  %s437_s21 = sshll.u32 %s583_s15, 2  ;;  %v252_v3 = vld [vmem:[%s573_s0] sm:$0xff]  ;;  %vm255_vm2 = vcmask 31744   ;;  %s438_s27 = sshll.u32 %s583_s15, 3  ;;  %vm341_vm3 = vcmask 523264  }
   0xe   : > { %478 = vset.pattern.permute.xlu0 %v505_v2  ;;  %s237_s24 = scalar_lea.vmem %s575_s2, %s437_s21  ;;  %s244_s30 = scalar_lea.vmem %s576_s3, %s438_s27 }
   0xf   : > { %337 = vperm.xlu0 %478, %v253_v1   ;;  %v254_v4 = vld [vmem:[%s237_s24] sm:$0xf]  ;;  %s251_s7 = scalar_lea.vmem %s577_s4, %s438_s27 }
  0x10   : > { %447 = vmatpush3.msk.msra.mxu0 %vm259_vm1, %v254_v4  ;;  %v333_v5 = vld [vmem:[%s244_s30] sm:$0xff] }
  0x11   : > { %449 = vmatmul.mubr.msk.f32.vlgmr.msra.gmra.mxu0 %vm255_vm2, %v252_v3 }
  0x8a   : > { %v338_v7 = vpop.permute.xlu0 %337 }
  0xd1   : > { %v329_v6 = vpop.f32.mrf.mxu0 }
  0xd2   : > { %v334_v8 = vadd.f32 %v333_v5, %v329_v6 }
  0xd3   : > { %v450_v9 = vpop.f32.mrf.mxu0 }
  0xd4   : > { %v340_v10 = vadd.f32 %v338_v7, %v334_v8 }
  0xd6   : > { %342 = vst.msk [vmem:[%s251_s7] sm:$0xff] %vm341_vm3, %v340_v10 }
  0xd7 PF: > { %s14_s17 = sadd.s32 1, %s501_s17   ;;  %s578_s15 = smov %s497_s16 }
  0xd8   : > { %p11_p5 = scmp.ge.s32.totalorder %s14_s17, 4   ;;  %s579_s16 = smov %s581_s18 }
  0xda   :  { %13 = sbr.rel (!%p11_p5) target bundleno = 2 (0x2), region = 69 }

// kernel: _downsample_impl.1
= control target key start
LH: loop header
LB: loop body
LE: loop exit
PB: predicated region body
PF: predicated region fallthrough
CT: control target
= control target key end

     0   :  { %s531_s15 = smov 0   ;;  %s533_s16 = smov 0   ;;  %s573_s0 = inlined_call_operand.vmem [shape: f32[8,4], index: 0, kind: input, shape index: {}]   ;;  %s574_s1 = inlined_call_operand.vmem [shape: f32[8,1], index: 1, kind: input, shape index: {}]   ;;  %s575_s2 = inlined_call_operand.vmem [shape: f32[2,4,64], index: 2, kind: input, shape index: {}]   ;;  %s576_s3 = inlined_call_operand.vmem [shape: f32[2,8,64], index: 3, kind: input, shape index: {}]   ;;  %s577_s4 = inlined_call_operand.vmem [shape: f32[2,8,64], index: 4, kind: output, shape index: {}]  }
   0x1   :  { %s535_s17 = smov 0  }
   0x2 LB: > { %s26_s18 = sadd.s32 1, %s497_s16  ;;  %p436_p0 = scmp.ge.s32.totalorder %s501_s17, 1  ;;  %s501_s17 = sphi %s535_s17, %s14_s17   ;;  %s497_s16 = sphi %s533_s16, %s579_s16   ;;  %s493_s15 = sphi %s531_s15, %s578_s15  }
   0x3   : > { %p28_p1 = scmp.ge.s32.totalorder %s26_s18, 2  ;;  %p194_p2 = scmp.lt.s32.totalorder %s501_s17, 3 }
   0x5   : > { %s581_s18 = smov (%p28_p1, %s26_s18), 0  ;;  %p195_p3 = pnand %p436_p0, %p194_p2 }
   0x6   : > { %p231_p4 = scmp.lt.s32.totalorder (!%p195_p3), %s493_s15, 1 }
   0x7   : > { %198 = sbr.rel (%p195_p3) target bundleno = 215 (0xd7), region = 36 }
   0xc   : > { %v503_v0 = vmov 0.0   ;;  %vm504_vm0 = vmmov 0   ;;  %v253_v1 = vld [vmem:[%s574_s1] sm:$0xff]  ;;  %s583_s15 = smov (!%p231_p4, %s493_s15), 1  ;;  %v505_v2 = vmov 0   ;;  %vm259_vm1 = vcmask 1043456  }
   0xd   : > { %446 = vmatprep.subr.mxu0 %v503_v0  ;;  %448 = vmatprep.mubr.msk.f32.mxu0 %vm504_vm0, %v503_v0  ;;  %s437_s21 = sshll.u32 %s583_s15, 2  ;;  %v252_v3 = vld [vmem:[%s573_s0] sm:$0xff]  ;;  %vm255_vm2 = vcmask 31744   ;;  %s438_s27 = sshll.u32 %s583_s15, 3  ;;  %vm341_vm3 = vcmask 523264  }
   0xe   : > { %478 = vset.pattern.permute.xlu0 %v505_v2  ;;  %s237_s24 = scalar_lea.vmem %s575_s2, %s437_s21  ;;  %s244_s30 = scalar_lea.vmem %s576_s3, %s438_s27 }
   0xf   : > { %337 = vperm.xlu0 %478, %v253_v1   ;;  %v254_v4 = vld [vmem:[%s237_s24] sm:$0xf]  ;;  %s251_s7 = scalar_lea.vmem %s577_s4, %s438_s27 }
  0x10   : > { %447 = vmatpush3.msk.msra.mxu0 %vm259_vm1, %v254_v4  ;;  %v333_v5 = vld [vmem:[%s244_s30] sm:$0xff] }
  0x11   : > { %449 = vmatmul.mubr.msk.f32.vlgmr.msra.gmra.mxu0 %vm255_vm2, %v252_v3 }
  0x8a   : > { %v338_v7 = vpop.permute.xlu0 %337 }
  0xd1   : > { %v329_v6 = vpop.f32.mrf.mxu0 }
  0xd2   : > { %v334_v8 = vadd.f32 %v333_v5, %v329_v6 }
  0xd3   : > { %v450_v9 = vpop.f32.mrf.mxu0 }
  0xd4   : > { %v340_v10 = vadd.f32 %v338_v7, %v334_v8 }
  0xd6   : > { %342 = vst.msk [vmem:[%s251_s7] sm:$0xff] %vm341_vm3, %v340_v10 }
  0xd7 PF: > { %s14_s17 = sadd.s32 1, %s501_s17   ;;  %s578_s15 = smov %s497_s16 }
  0xd8   : > { %p11_p5 = scmp.ge.s32.totalorder %s14_s17, 4   ;;  %s579_s16 = smov %s581_s18 }
  0xda   :  { %13 = sbr.rel (!%p11_p5) target bundleno = 2 (0x2), region = 69 }

</bundles_post_ra>
